<compile_context>
chip_gen: v5e
topology: v5e:2x2
jax: 0.10.0
libtpu: 0.0.40
codegen_flags: <defaults>
</compile_context>

<pallas_src>
import jax
import jax.numpy as jnp
from jax.experimental import pallas as pl
from jax.experimental.pallas import tpu as pltpu

NUM_HEADS = 20
NUM_EXERCISES = 13
EMB_DIM = 3
FEAT_IN = 3
FEAT_OUT = 5
X_DIM = EMB_DIM + FEAT_OUT            # 8
H1 = 10
F_ALL = NUM_HEADS * FEAT_IN           # 60
HID_ALL = NUM_HEADS * H1              # 200
ONEHOT_DIM = NUM_HEADS * NUM_EXERCISES  # 260


def _multihead_kernel(e_ref, f_ref, r_ref, u_ref, w1f_ref, b1_ref, w2_ref,
                      b2_ref, s_ref, out_ref):
    # e_ref:   (Bt, 20)   int32  exercise ids
    # f_ref:   (Bt, 60)   f32    raw features, 3 per head (h-major)
    # r_ref:   (20, 260)  mmdt   id -> per-(head, slot) replication (0/1)
    # u_ref:   (260, 200) mmdt   block-diag: one-hot -> pre1 (embedding folded)
    # w1f_ref: (60, 200)  mmdt   block-diag: raw feature -> pre1 (3->5 folded)
    # b1_ref:  (1, 200)   f32
    # w2_ref:  (200, 20)  mmdt   block-diag: hidden -> pre2
    # b2_ref:  (1, 20)    f32
    # s_ref:   (60, 20)   f32    selects f[:, 3h+1] per head (exact mask input)
    # out_ref: (Bt, 1)    f32
    f32 = jnp.float32
    mmdt = u_ref.dtype                     # bf16 (default) or f32

    f = f_ref[...]                                                  # (Bt, 60)
    e_mm = e_ref[...].astype(f32).astype(mmdt)       # ids 0..12, exact in bf16

    # --- embedding lookup as an exact one-hot, built on the MXU -------------
    # e_rep[b, h*13 + k] = e[b, h]; 0/1 weights, small ints, f32 acc => exact.
    e_rep = jnp.dot(e_mm, r_ref[...], preferred_element_type=f32)   # (Bt, 260)
    kpat = jax.lax.broadcasted_iota(jnp.int32, (1, ONEHOT_DIM), 1)
    kpat = (kpat % NUM_EXERCISES).astype(f32)
    onehot = jnp.where(e_rep == kpat, 1.0, 0.0).astype(mmdt)        # (Bt, 260)

    # --- first per-head Linear (8 -> 10), all heads at once (block-diag) ----
    pre1 = jnp.dot(onehot, u_ref[...], preferred_element_type=f32)  # emb part
    pre1 = pre1 + jnp.dot(f.astype(mmdt), w1f_ref[...],
                          preferred_element_type=f32)               # feat part
    pre1 = pre1 + b1_ref[...]                                       # (Bt, 200)
    a1 = jnp.maximum(pre1, 0.01 * pre1)               # LeakyReLU(0.01), 2 ops

    # --- second per-head Linear (10 -> 1), block-diagonal -------------------
    pre2 = jnp.dot(a1.astype(mmdt), w2_ref[...], preferred_element_type=f32)
    pre2 = pre2 + b2_ref[...]                                       # (Bt, 20)

    # Softplus (beta=1, threshold=20), torch semantics.
    sp = jnp.where(pre2 > 20.0, pre2,
                   jnp.log(1.0 + jnp.exp(jnp.minimum(pre2, 20.0))))

    # Mask on the *raw* feature f[:, :, 1]: exact f32 selection matmul.
    f1 = jnp.dot(f, s_ref[...], preferred_element_type=f32)         # (Bt, 20)
    masked = jnp.where(f1 == 0.0, 0.0, sp)

    out_ref[...] = jnp.sum(masked, axis=1, keepdims=True)


def _round_up(x, m):
    return (x + m - 1) // m * m


def _block_diag(blocks):
    """(H, r, c) -> (H*r, H*c) block-diagonal matrix."""
    h, r, c = blocks.shape
    eye = jnp.eye(h, dtype=blocks.dtype)
    return jnp.einsum('hrc,hg->hrgc', blocks, eye).reshape(h * r, h * c)


def airfit_multihead_dnn(params, e, f, *, block_b=None,
                         matmul_dtype=jnp.bfloat16):
    """e: (B, 20) int exercise ids; f: (B, 60) float features. Returns (B, 1)."""
    B = e.shape[0]
    e = e.reshape(B, NUM_HEADS).astype(jnp.int32)
    f = f.reshape(B, F_ALL).astype(jnp.float32)

    # --- fold params into block-diagonal matmul weights (tiny, one-off) -----
    w1 = params['w1'].astype(jnp.float32)                           # (20, 8, 10)
    w1e = w1[:, :EMB_DIM, :]                                        # (20, 3, 10)
    # shared 3->5 feature Linear folded into each head's first Linear
    w1f = jnp.einsum('io,hop->hip', params['fw'], w1[:, EMB_DIM:, :])   # (20,3,10)
    b1eff = params['b1'][:, 0, :] + jnp.einsum(
        'o,hop->hp', params['fb'].reshape(-1), w1[:, EMB_DIM:, :])      # (20, 10)
    # embedding table folded through the first Linear: per-head (13, 10) table
    u = jnp.einsum('kd,hdp->hkp', params['emb'].astype(jnp.float32), w1e)

    r_mat = jnp.repeat(jnp.eye(NUM_HEADS, dtype=jnp.float32),
                       NUM_EXERCISES, axis=1)                       # (20, 260)
    u_bd = _block_diag(u)                                           # (260, 200)
    w1f_bd = _block_diag(w1f)                                       # (60, 200)
    w2_bd = _block_diag(
        params['w2'].astype(jnp.float32).reshape(NUM_HEADS, H1, 1))  # (200, 20)
    s_mat = jnp.zeros((F_ALL, NUM_HEADS), jnp.float32)
    s_mat = s_mat.at[jnp.arange(NUM_HEADS) * FEAT_IN + 1,
                     jnp.arange(NUM_HEADS)].set(1.0)                # (60, 20)
    b1row = b1eff.reshape(1, HID_ALL).astype(jnp.float32)
    b2row = params['b2'].reshape(1, NUM_HEADS).astype(jnp.float32)

    r_mat, u_bd, w1f_bd, w2_bd = (r_mat.astype(matmul_dtype),
                                  u_bd.astype(matmul_dtype),
                                  w1f_bd.astype(matmul_dtype),
                                  w2_bd.astype(matmul_dtype))

    # --- batch tiling: big tiles amortize per-step overhead; keep >=4 steps
    #     when the batch allows so the v7x megacore can split the grid. -------
    if block_b is None:
        block_b = min(2048, _round_up(max(1, B // 4), 8), _round_up(B, 8))
        block_b = max(8, block_b)
    B_pad = _round_up(B, 8)
    if B_pad != B:
        e = jnp.pad(e, ((0, B_pad - B), (0, 0)))
        f = jnp.pad(f, ((0, B_pad - B), (0, 0)))   # f[...,1]==0 -> mask kills rows
    num_blocks = -(-B_pad // block_b)              # last block may be partial

    def const_spec(arr):
        return pl.BlockSpec(arr.shape, lambda i: (0, 0))   # VMEM-resident weight

    out = pl.pallas_call(
        _multihead_kernel,
        out_shape=jax.ShapeDtypeStruct((B_pad, 1), jnp.float32),
        grid=(num_blocks,),
        in_specs=[
            pl.BlockSpec((block_b, NUM_HEADS), lambda i: (i, 0)),   # e ids
            pl.BlockSpec((block_b, F_ALL), lambda i: (i, 0)),       # raw features
            const_spec(r_mat), const_spec(u_bd), const_spec(w1f_bd),
            const_spec(b1row), const_spec(w2_bd), const_spec(b2row),
            const_spec(s_mat),
        ],
        out_specs=pl.BlockSpec((block_b, 1), lambda i: (i, 0)),
        compiler_params=pltpu.CompilerParams(
            dimension_semantics=("parallel",)),
    )(e, f, r_mat, u_bd, w1f_bd, b1row, w2_bd, b2row, s_mat)

    return out[:B]


def init_params(key):
    ks = jax.random.split(key, 7)
    # nn.Embedding(13, 3), row 0 zeroed (as in __init__).
    emb = jax.random.normal(ks[0], (NUM_EXERCISES, EMB_DIM), jnp.float32)
    emb = emb.at[0].set(0.0)
    # nn.Linear(3, 5): stored pre-transposed as (in, out).
    lim_f = 1.0 / jnp.sqrt(jnp.float32(FEAT_IN))
    fw = jax.random.uniform(ks[1], (FEAT_IN, FEAT_OUT), jnp.float32, -lim_f, lim_f)
    fb = jax.random.uniform(ks[2], (1, 1, FEAT_OUT), jnp.float32, -lim_f, lim_f)
    # 20 heads: Linear(8,10) -> LeakyReLU -> Linear(10,1) -> Softplus, stacked.
    lim1 = 1.0 / jnp.sqrt(jnp.float32(X_DIM))
    w1 = jax.random.uniform(ks[3], (NUM_HEADS, X_DIM, H1), jnp.float32, -lim1, lim1)
    b1 = jax.random.uniform(ks[4], (NUM_HEADS, 1, H1), jnp.float32, -lim1, lim1)
    lim2 = 1.0 / jnp.sqrt(jnp.float32(H1))
    w2 = jax.random.uniform(ks[5], (NUM_HEADS, H1), jnp.float32, -lim2, lim2)
    b2 = jax.random.uniform(ks[6], (NUM_HEADS, 1), jnp.float32, -lim2, lim2)
    return dict(emb=emb, fw=fw, fb=fb, w1=w1, b1=b1, w2=w2, b2=b2)


def reference_forward(params, e, f):
    """Pure-JAX f32 reference mirroring the PyTorch forward (un-folded math)."""
    B = e.shape[0]
    emb = jnp.take(params['emb'], e, axis=0)                       # (B, 20, 3)
    f3 = f.reshape(B, NUM_HEADS, FEAT_IN)
    mask = jnp.where(f3[:, :, 1] == 0, 0.0, 1.0)                   # (B, 20)
    feat = jnp.einsum('bhi,io->bho', f3, params['fw']) + params['fb'][0]
    x = jnp.concatenate([emb, feat], axis=2)                       # (B, 20, 8)
    pre1 = jnp.einsum('bhi,hio->bho', x, params['w1']) + params['b1'][:, 0][None]
    a1 = jnp.where(pre1 >= 0, pre1, 0.01 * pre1)
    pre2 = jnp.einsum('bho,ho->bh', a1, params['w2']) + params['b2'][:, 0][None]
    sp = jnp.where(pre2 > 20.0, pre2, jnp.log1p(jnp.exp(jnp.minimum(pre2, 20.0))))
    return jnp.sum(sp * mask, axis=1).reshape(-1, 1)


if __name__ == "__main__":
    key = jax.random.PRNGKey(0)
    pkey, ekey, fkey = jax.random.split(key, 3)
    params = init_params(pkey)

    B = 4
    e = jax.random.randint(ekey, (B, NUM_HEADS), 0, NUM_EXERCISES, jnp.int32)
    f3 = jax.random.normal(fkey, (B, NUM_HEADS, FEAT_IN), jnp.float32)
    # Zero out some of the "second feature" entries so the mask path is exercised.
    f3 = f3.at[:, ::3, 1].set(0.0)
    f = f3.reshape(B, NUM_HEADS * FEAT_IN)

    ref = jax.block_until_ready(reference_forward(params, e, f))

    # Default fast path: bf16 MXU matmuls with f32 accumulation (per perf review).
    out = jax.block_until_ready(airfit_multihead_dnn(params, e, f))
    assert out.shape == (B, 1)
    assert jnp.allclose(out, ref, atol=1e-1, rtol=3e-2), (out, ref)

    # Exact-math check of the same kernel with f32 matmuls (tight tolerance).
    out_f32 = jax.block_until_ready(
        airfit_multihead_dnn(params, e, f, matmul_dtype=jnp.float32))
    assert jnp.allclose(out_f32, ref, atol=1e-3, rtol=1e-3), (out_f32, ref)

    print("KERNEL_OK")
</pallas_src>

<mosaic_0001>
module attributes {stable_mosaic.version = 11 : i64} {
  func.func @_multihead_kernel(%arg0: i32, %arg1: memref<8x20xi32, #tpu.memory_space<vmem>>, %arg2: memref<8x60xf32, #tpu.memory_space<vmem>>, %arg3: memref<20x260xbf16, #tpu.memory_space<vmem>>, %arg4: memref<260x200xbf16, #tpu.memory_space<vmem>>, %arg5: memref<60x200xbf16, #tpu.memory_space<vmem>>, %arg6: memref<1x200xf32, #tpu.memory_space<vmem>>, %arg7: memref<200x20xbf16, #tpu.memory_space<vmem>>, %arg8: memref<1x20xf32, #tpu.memory_space<vmem>>, %arg9: memref<60x20xf32, #tpu.memory_space<vmem>>, %arg10: memref<8x1xf32, #tpu.memory_space<vmem>>) attributes {dimension_semantics = [#tpu.dimension_semantics<parallel>], iteration_bounds = array<i64: 1>, scalar_prefetch = 0 : i64, scratch_operands = 0 : i64, tpu.core_type = #tpu.core_type<tc>, window_params = [{transform_indices = @transform_0, window_bounds = array<i64: 8, 20>}, {transform_indices = @transform_1, window_bounds = array<i64: 8, 60>}, {pipeline_mode = #tpu.pipeline_mode<synchronous>, transform_indices = @transform_2, window_bounds = array<i64: 20, 260>}, {pipeline_mode = #tpu.pipeline_mode<synchronous>, transform_indices = @transform_3, window_bounds = array<i64: 260, 200>}, {pipeline_mode = #tpu.pipeline_mode<synchronous>, transform_indices = @transform_4, window_bounds = array<i64: 60, 200>}, {pipeline_mode = #tpu.pipeline_mode<synchronous>, transform_indices = @transform_5, window_bounds = array<i64: 1, 200>}, {pipeline_mode = #tpu.pipeline_mode<synchronous>, transform_indices = @transform_6, window_bounds = array<i64: 200, 20>}, {pipeline_mode = #tpu.pipeline_mode<synchronous>, transform_indices = @transform_7, window_bounds = array<i64: 1, 20>}, {pipeline_mode = #tpu.pipeline_mode<synchronous>, transform_indices = @transform_8, window_bounds = array<i64: 60, 20>}, {transform_indices = @transform_9, window_bounds = array<i64: 8, 1>}]} {
    %c0 = arith.constant 0 : index
    %c0_0 = arith.constant 0 : index
    %0 = vector.load %arg2[%c0, %c0_0] : memref<8x60xf32, #tpu.memory_space<vmem>>, vector<8x60xf32>
    %c0_1 = arith.constant 0 : index
    %c0_2 = arith.constant 0 : index
    %1 = vector.load %arg1[%c0_1, %c0_2] : memref<8x20xi32, #tpu.memory_space<vmem>>, vector<8x20xi32>
    %2 = arith.sitofp %1 : vector<8x20xi32> to vector<8x20xf32>
    %3 = arith.truncf %2 : vector<8x20xf32> to vector<8x20xbf16>
    %c0_3 = arith.constant 0 : index
    %c0_4 = arith.constant 0 : index
    %4 = vector.load %arg3[%c0_3, %c0_4] : memref<20x260xbf16, #tpu.memory_space<vmem>>, vector<20x260xbf16>
    %cst = arith.constant dense<0.000000e+00> : vector<8x260xf32>
    %5 = tpu.matmul %3, %4, %cst {dimension_numbers = #tpu.dot_dimension_numbers<[1], [0], [0], [1], [0, 0, 1, 1], [], []>} : vector<8x20xbf16>, vector<20x260xbf16>, vector<8x260xf32> -> vector<8x260xf32>
    %6 = tpu.iota {dimensions = array<i32: 1>} : vector<1x260xi32>
    %c13_i32 = arith.constant 13 : i32
    %c0_i32 = arith.constant 0 : i32
    %7 = arith.cmpi eq, %c13_i32, %c0_i32 : i32
    %c1_i32 = arith.constant 1 : i32
    %8 = arith.select %7, %c1_i32, %c13_i32 : i32
    %9 = vector.broadcast %8 : i32 to vector<1x260xi32>
    %10 = arith.remsi %6, %9 : vector<1x260xi32>
    %c0_i32_5 = arith.constant 0 : i32
    %11 = vector.broadcast %c0_i32_5 : i32 to vector<1x260xi32>
    %12 = arith.cmpi ne, %10, %11 : vector<1x260xi32>
    %c0_i32_6 = arith.constant 0 : i32
    %13 = vector.broadcast %c0_i32_6 : i32 to vector<1x260xi32>
    %14 = arith.cmpi slt, %10, %13 : vector<1x260xi32>
    %c0_i32_7 = arith.constant 0 : i32
    %15 = arith.cmpi slt, %8, %c0_i32_7 : i32
    %16 = vector.broadcast %15 : i1 to vector<1x260xi1>
    %17 = vector.broadcast %16 : vector<1x260xi1> to vector<1x260xi1>
    %18 = arith.xori %14, %17 : vector<1x260xi1>
    %19 = arith.andi %18, %12 : vector<1x260xi1>
    %20 = vector.broadcast %8 : i32 to vector<1x260xi32>
    %21 = arith.addi %10, %20 : vector<1x260xi32>
    %22 = arith.select %19, %21, %10 : vector<1x260xi1>, vector<1x260xi32>
    %23 = arith.sitofp %22 : vector<1x260xi32> to vector<1x260xf32>
    %24 = vector.broadcast %23 : vector<1x260xf32> to vector<8x260xf32>
    %25 = arith.cmpf oeq, %5, %24 : vector<8x260xf32>
    %cst_8 = arith.constant 1.000000e+00 : f32
    %cst_9 = arith.constant 0.000000e+00 : f32
    %26 = vector.broadcast %cst_8 : f32 to vector<8x260xf32>
    %27 = vector.broadcast %cst_9 : f32 to vector<8x260xf32>
    %28 = arith.select %25, %26, %27 : vector<8x260xi1>, vector<8x260xf32>
    %29 = arith.truncf %28 : vector<8x260xf32> to vector<8x260xbf16>
    %c0_10 = arith.constant 0 : index
    %c0_11 = arith.constant 0 : index
    %30 = vector.load %arg4[%c0_10, %c0_11] : memref<260x200xbf16, #tpu.memory_space<vmem>>, vector<260x200xbf16>
    %cst_12 = arith.constant dense<0.000000e+00> : vector<8x200xf32>
    %31 = tpu.matmul %29, %30, %cst_12 {dimension_numbers = #tpu.dot_dimension_numbers<[1], [0], [0], [1], [0, 0, 1, 1], [], []>} : vector<8x260xbf16>, vector<260x200xbf16>, vector<8x200xf32> -> vector<8x200xf32>
    %32 = arith.truncf %0 : vector<8x60xf32> to vector<8x60xbf16>
    %c0_13 = arith.constant 0 : index
    %c0_14 = arith.constant 0 : index
    %33 = vector.load %arg5[%c0_13, %c0_14] : memref<60x200xbf16, #tpu.memory_space<vmem>>, vector<60x200xbf16>
    %cst_15 = arith.constant dense<0.000000e+00> : vector<8x200xf32>
    %34 = tpu.matmul %32, %33, %cst_15 {dimension_numbers = #tpu.dot_dimension_numbers<[1], [0], [0], [1], [0, 0, 1, 1], [], []>} : vector<8x60xbf16>, vector<60x200xbf16>, vector<8x200xf32> -> vector<8x200xf32>
    %35 = arith.addf %31, %34 : vector<8x200xf32>
    %c0_16 = arith.constant 0 : index
    %c0_17 = arith.constant 0 : index
    %36 = vector.load %arg6[%c0_16, %c0_17] : memref<1x200xf32, #tpu.memory_space<vmem>>, vector<1x200xf32>
    %37 = vector.broadcast %36 : vector<1x200xf32> to vector<8x200xf32>
    %38 = arith.addf %35, %37 : vector<8x200xf32>
    %cst_18 = arith.constant 0.00999999977 : f32
    %39 = vector.broadcast %cst_18 : f32 to vector<8x200xf32>
    %40 = arith.mulf %39, %38 : vector<8x200xf32>
    %41 = arith.maximumf %38, %40 : vector<8x200xf32>
    %42 = arith.truncf %41 : vector<8x200xf32> to vector<8x200xbf16>
    %c0_19 = arith.constant 0 : index
    %c0_20 = arith.constant 0 : index
    %43 = vector.load %arg7[%c0_19, %c0_20] : memref<200x20xbf16, #tpu.memory_space<vmem>>, vector<200x20xbf16>
    %cst_21 = arith.constant dense<0.000000e+00> : vector<8x20xf32>
    %44 = tpu.matmul %42, %43, %cst_21 {dimension_numbers = #tpu.dot_dimension_numbers<[1], [0], [0], [1], [0, 0, 1, 1], [], []>} : vector<8x200xbf16>, vector<200x20xbf16>, vector<8x20xf32> -> vector<8x20xf32>
    %c0_22 = arith.constant 0 : index
    %c0_23 = arith.constant 0 : index
    %45 = vector.load %arg8[%c0_22, %c0_23] : memref<1x20xf32, #tpu.memory_space<vmem>>, vector<1x20xf32>
    %46 = vector.broadcast %45 : vector<1x20xf32> to vector<8x20xf32>
    %47 = arith.addf %44, %46 : vector<8x20xf32>
    %cst_24 = arith.constant 2.000000e+01 : f32
    %48 = vector.broadcast %cst_24 : f32 to vector<8x20xf32>
    %49 = arith.cmpf ogt, %47, %48 : vector<8x20xf32>
    %cst_25 = arith.constant 2.000000e+01 : f32
    %50 = vector.broadcast %cst_25 : f32 to vector<8x20xf32>
    %51 = arith.minimumf %47, %50 : vector<8x20xf32>
    %52 = math.exp %51 : vector<8x20xf32>
    %cst_26 = arith.constant 1.000000e+00 : f32
    %53 = vector.broadcast %cst_26 : f32 to vector<8x20xf32>
    %54 = arith.addf %53, %52 : vector<8x20xf32>
    %55 = math.log %54 : vector<8x20xf32>
    %56 = arith.select %49, %47, %55 : vector<8x20xi1>, vector<8x20xf32>
    %c0_27 = arith.constant 0 : index
    %c0_28 = arith.constant 0 : index
    %57 = vector.load %arg9[%c0_27, %c0_28] : memref<60x20xf32, #tpu.memory_space<vmem>>, vector<60x20xf32>
    %cst_29 = arith.constant dense<0.000000e+00> : vector<8x20xf32>
    %58 = tpu.matmul %0, %57, %cst_29 {dimension_numbers = #tpu.dot_dimension_numbers<[1], [0], [0], [1], [0, 0, 1, 1], [], []>} : vector<8x60xf32>, vector<60x20xf32>, vector<8x20xf32> -> vector<8x20xf32>
    %cst_30 = arith.constant 0.000000e+00 : f32
    %59 = vector.broadcast %cst_30 : f32 to vector<8x20xf32>
    %60 = arith.cmpf oeq, %58, %59 : vector<8x20xf32>
    %cst_31 = arith.constant 0.000000e+00 : f32
    %61 = vector.broadcast %cst_31 : f32 to vector<8x20xf32>
    %62 = arith.select %60, %61, %56 : vector<8x20xi1>, vector<8x20xf32>
    %cst_32 = arith.constant dense<0.000000e+00> : vector<8xf32>
    %63 = vector.multi_reduction <add>, %62, %cst_32 [1] : vector<8x20xf32> to vector<8xf32>
    %64 = vector.shape_cast %63 : vector<8xf32> to vector<8x1xf32>
    %c0_33 = arith.constant 0 : index
    %c0_34 = arith.constant 0 : index
    %65 = vector.load %arg10[%c0_33, %c0_34] : memref<8x1xf32, #tpu.memory_space<vmem>>, vector<8x1xf32>
    tpu.vector_store %arg10[%c0_33, %c0_34], %64 {strides = array<i32>} : memref<8x1xf32, #tpu.memory_space<vmem>>, vector<8x1xf32>,
    return
  }
  func.func @transform_0(%arg0: i32) -> (i32, i32) {
    %c0_i32 = arith.constant 0 : i32
    %c0_i32_0 = arith.constant 0 : i32
    return %arg0, %c0_i32 : i32, i32
  }
  func.func @transform_1(%arg0: i32) -> (i32, i32) {
    %c0_i32 = arith.constant 0 : i32
    %c0_i32_0 = arith.constant 0 : i32
    return %arg0, %c0_i32 : i32, i32
  }
  func.func @transform_2(%arg0: i32) -> (i32, i32) {
    %c0_i32 = arith.constant 0 : i32
    %c0_i32_0 = arith.constant 0 : i32
    %c0_i32_1 = arith.constant 0 : i32
    return %c0_i32, %c0_i32_0 : i32, i32
  }
  func.func @transform_3(%arg0: i32) -> (i32, i32) {
    %c0_i32 = arith.constant 0 : i32
    %c0_i32_0 = arith.constant 0 : i32
    %c0_i32_1 = arith.constant 0 : i32
    return %c0_i32, %c0_i32_0 : i32, i32
  }
  func.func @transform_4(%arg0: i32) -> (i32, i32) {
    %c0_i32 = arith.constant 0 : i32
    %c0_i32_0 = arith.constant 0 : i32
    %c0_i32_1 = arith.constant 0 : i32
    return %c0_i32, %c0_i32_0 : i32, i32
  }
  func.func @transform_5(%arg0: i32) -> (i32, i32) {
    %c0_i32 = arith.constant 0 : i32
    %c0_i32_0 = arith.constant 0 : i32
    %c0_i32_1 = arith.constant 0 : i32
    return %c0_i32, %c0_i32_0 : i32, i32
  }
  func.func @transform_6(%arg0: i32) -> (i32, i32) {
    %c0_i32 = arith.constant 0 : i32
    %c0_i32_0 = arith.constant 0 : i32
    %c0_i32_1 = arith.constant 0 : i32
    return %c0_i32, %c0_i32_0 : i32, i32
  }
  func.func @transform_7(%arg0: i32) -> (i32, i32) {
    %c0_i32 = arith.constant 0 : i32
    %c0_i32_0 = arith.constant 0 : i32
    %c0_i32_1 = arith.constant 0 : i32
    return %c0_i32, %c0_i32_0 : i32, i32
  }
  func.func @transform_8(%arg0: i32) -> (i32, i32) {
    %c0_i32 = arith.constant 0 : i32
    %c0_i32_0 = arith.constant 0 : i32
    %c0_i32_1 = arith.constant 0 : i32
    return %c0_i32, %c0_i32_0 : i32, i32
  }
  func.func @transform_9(%arg0: i32) -> (i32, i32) {
    %c0_i32 = arith.constant 0 : i32
    %c0_i32_0 = arith.constant 0 : i32
    return %arg0, %c0_i32 : i32, i32
  }
}

</mosaic_0001>

<bundles_post_ra>
// kernel: tpu_custom_call.1
= control target key start
LH: loop header
LB: loop body
LE: loop exit
PB: predicated region body
PF: predicated region fallthrough
CT: control target
= control target key end

     0   :  { %14 = vsyncpa [#allocation3], 0  ;;  %s1160_s12 = smov [#allocation2]   ;;  %s1161_s14 = smov 128   ;;  %s1430_s0 = inlined_call_operand.vmem [shape: s32[8,20], index: 0, kind: input, shape index: {}]   ;;  %s1431_s1 = inlined_call_operand.vmem [shape: f32[8,60], index: 1, kind: input, shape index: {}]   ;;  %s1432_s2 = inlined_call_operand.vmem [shape: bf16[20,260], index: 2, kind: input, shape index: {}]   ;;  %s1433_s3 = inlined_call_operand.hbm [shape: bf16[260,200], index: 3, kind: input, shape index: {}]   ;;  %s1434_s4 = inlined_call_operand.vmem [shape: bf16[60,200], index: 4, kind: input, shape index: {}]   ;;  %s1435_s5 = inlined_call_operand.vmem [shape: f32[1,200], index: 5, kind: input, shape index: {}]   ;;  %s1436_s6 = inlined_call_operand.vmem [shape: bf16[200,20], index: 6, kind: input, shape index: {}]   ;;  %s1437_s7 = inlined_call_operand.vmem [shape: f32[1,20], index: 7, kind: input, shape index: {}]   ;;  %s1438_s8 = inlined_call_operand.vmem [shape: f32[60,20], index: 8, kind: input, shape index: {}]   ;;  %s1439_s9 = inlined_call_operand.vmem [shape: f32[8,1], index: 9, kind: output, shape index: {}]  }
   0x1   :  { %s25_s11 = sshll.u32 %s1433_s3, 4  ;;  %s27_s13 = sshll.u32 %s1160_s12, 4  ;;  %s26_s11 = int_to_ptr.hbm [resolvable:$true] %s25_s11  ;;  %s28_s13 = int_to_ptr.vmem [resolvable:$true] %s27_s13 }
   0x2   :  { %s1162_s15 = smov 8  }
   0x3   :  { %33 = dma.hbm_to_vmem [thread:$0]  %s26_s11, 4224, %s28_s13, [#allocation3], %s1161_s14, %s1161_s14, %s1162_s15  }
   0x4   :  { %1158 = dma.done.wait [#allocation3], 4224  }
   0x5   :  { %1159 = vsyncadd [#allocation3], 4294963072  ;;  %v57_v0 = vld [vmem:[%s1432_s2 + $0x18] sm:$0x33]  ;;  %v58_v1 = vld [vmem:[%s1432_s2 + $0x20] sm:$0x3] }
   0x6   :  { %v71_v2 = vunpack.c.l.b16 %v57_v0  ;;  %vm87_vm0 = vcmask 1041408   ;;  %v72_v3 = vunpack.c.h.b16 %v57_v0  ;;  %v73_v4 = vunpack.c.l.b16 %v58_v1  ;;  %v832_v5 = vld [vmem:[%s1432_s2] sm:$0xf]  ;;  %v1069_v6 = vld [vmem:[%s1432_s2 + $0x8] sm:$0xf0] }
   0x7   :  { %v1068_v7 = vld [vmem:[%s1432_s2 + $0x4] sm:$0xf]  ;;  %v834_v8 = vld [vmem:[%s1432_s2 + $0xc] sm:$0xf0]  ;;  %vm338_vm1 = vcmask 1045504   ;;  %v833_v25 = vor.u32 %v1069_v6, %v832_v5  ;;  %vm83_vm2 = vcmask 162816  }
   0x8   :  { %v50_v9 = vld [vmem:[%s1430_s0] sm:$0xff]  ;;  %v77_v10 = vpack.c.b16 %v71_v2, %v71_v2  ;;  %v78_v11 = vpack.c.b16 %v72_v3, %v72_v3  ;;  %v79_v12 = vpack.c.b16 %v73_v4, %v73_v4  ;;  %v840_v13 = vld [vmem:[%s1432_s2 + $0x8] sm:$0xf]  ;;  %v1109_v14 = vld [vmem:[%s1434_s4 + $0x34] sm:$0xf]  ;;  %v837_v26 = vor.u32 %v1068_v7, %v834_v8 }
   0x9   :  { %v873_v15 = vld [vmem:[%s1434_s4 + $0x38] sm:$0x30]  ;;  %v1070_v16 = vld [vmem:[%s1432_s2 + $0x10] sm:$0xf0]  ;;  %v871_v18 = vld [vmem:[%s1434_s4 + $0x30] sm:$0xf]  ;;  %v51_v23 = vcvt.s32.f32 %v50_v9 }
   0xa   :  { %v876_v17 = vor.u32 %v1109_v14, %v873_v15  ;;  %v1110_v19 = vld [vmem:[%s1434_s4 + $0x34] sm:$0x30]  ;;  %v89_v20 = vsel %vm87_vm0, %v77_v10, 0  ;;  %v92_v21 = vsel %vm87_vm0, %v78_v11, 0  ;;  %v95_v22 = vsel %vm87_vm0, %v79_v12, 0  ;;  %v1305_v8 = vld [vmem:[%s1431_s1] sm:$0xff] }
   0xb   :  { %v937_v24 = vld [vmem:[#allocation2 + $0x70] sm:$0xf]  ;;  %103 = vmatpush.bf16.msra.mxu0 %v89_v20  ;;  %116 = vmatpush.bf16.msra.mxu1 %v92_v21  ;;  %v872_v27 = vor.u32 %v1110_v19, %v871_v18  ;;  %v1086_v28 = vld [vmem:[#allocation2 + $0x74] sm:$0xf0]  ;;  %v841_v30 = vor.u32 %v1070_v16, %v840_v13  ;;  %v1107_v31 = vld [vmem:[%s1434_s4 + $0x24] sm:$0xf]  ;;  %v52_v40 = vpack.c.bf16 %v51_v23, %v51_v23 }
   0xc   :  { %v1001_v29 = vld [vmem:[#allocation2 + $0xf0] sm:$0xf]  ;;  %129 = vmatpush.bf16.msra.mxu2 %v95_v22  ;;  %v865_v32 = vld [vmem:[%s1434_s4 + $0x28] sm:$0xf0]  ;;  %v1102_v33 = vld [vmem:[#allocation2 + $0xf4] sm:$0xf0]  ;;  %v938_v36 = vor.u32 %v1086_v28, %v937_v24  ;;  %v287_v16 = vpack.c.bf16 %v1305_v8, %v1305_v8 }
   0xd   :  { %v343_v34 = vsel %vm338_vm1, %v876_v17, 0  ;;  %v340_v35 = vsel %vm338_vm1, %v872_v27, 0  ;;  %v1002_v37 = vor.u32 %v1102_v33, %v1001_v29  ;;  %v863_v38 = vld [vmem:[%s1434_s4 + $0x20] sm:$0xf]  ;;  %v1108_v39 = vld [vmem:[%s1434_s4 + $0x24] sm:$0xf0]  ;;  %v868_v46 = vor.u32 %v1107_v31, %v865_v32 }
   0xe   :  { %349 = vmatpush.bf16.msra.mxu3 %v340_v35  ;;  %v929_v41 = vld [vmem:[#allocation2 + $0x60] sm:$0xf]  ;;  %v1084_v42 = vld [vmem:[#allocation2 + $0x64] sm:$0xf0]  ;;  %v864_v44 = vor.u32 %v1108_v39, %v863_v38  ;;  %v855_v47 = vld [vmem:[%s1434_s4 + $0x10] sm:$0xf] }
   0xf   :  { %v993_v43 = vld [vmem:[#allocation2 + $0xe0] sm:$0xf]  ;;  %104 = vmatpush.bf16.msra.mxu0 %v833_v25  ;;  %117 = vmatpush.bf16.msra.mxu1 %v837_v26  ;;  %v1100_v45 = vld [vmem:[#allocation2 + $0xe4] sm:$0xf0]  ;;  %v1106_v48 = vld [vmem:[%s1434_s4 + $0x14] sm:$0xf0]  ;;  %v930_v51 = vor.u32 %v1084_v42, %v929_v41 }
  0x10   :  { %130 = vmatpush.bf16.msra.mxu2 %v841_v30  ;;  %v1105_v49 = vld [vmem:[%s1434_s4 + $0x14] sm:$0xf]  ;;  %v857_v50 = vld [vmem:[%s1434_s4 + $0x18] sm:$0xf0]  ;;  %v994_v52 = vor.u32 %v1100_v45, %v993_v43  ;;  %v921_v53 = vld [vmem:[#allocation2 + $0x50] sm:$0xf]  ;;  %v856_v57 = vor.u32 %v1106_v48, %v855_v47 }
  0x11   :  { %v1082_v54 = vld [vmem:[#allocation2 + $0x54] sm:$0xf0]  ;;  %v985_v55 = vld [vmem:[#allocation2 + $0xd0] sm:$0xf]  ;;  %v860_v58 = vor.u32 %v1105_v49, %v857_v50  ;;  %v847_v59 = vld [vmem:[%s1434_s4] sm:$0xf] }
  0x12   :  { %842 = vmatmul.msk.bf16.vlgmr.msra.gmra.mxu0 %vm83_vm2, %v52_v40  ;;  %843 = vmatmul.msk.bf16.vlgmr.msra.gmra.mxu1 %vm83_vm2, %v52_v40  ;;  %v1098_v56 = vld [vmem:[#allocation2 + $0xd4] sm:$0xf0]  ;;  %v1104_v60 = vld [vmem:[%s1434_s4 + $0x4] sm:$0xf0]  ;;  %v1103_v61 = vld [vmem:[%s1434_s4 + $0x4] sm:$0xf]  ;;  %v922_v63 = vor.u32 %v1082_v54, %v921_v53 }
  0x13   :  { %362 = vmatpush.bf16.msrb.mxu0 %v343_v34  ;;  %546 = vmatpush.bf16.msrb.mxu1 %v938_v36  ;;  %v849_v62 = vld [vmem:[%s1434_s4 + $0x8] sm:$0xf0]  ;;  %v986_v0 = vor.u32 %v1098_v56, %v985_v55  ;;  %v1085_v1 = vld [vmem:[#allocation2 + $0x74] sm:$0xf]  ;;  %v939_v2 = vld [vmem:[#allocation2 + $0x78] sm:$0xf0]  ;;  %v848_v5 = vor.u32 %v1104_v60, %v847_v59 }
  0x14   :  { %559 = vmatpush.bf16.msrb.mxu2 %v1002_v37  ;;  %350 = vmatpush.bf16.msra.mxu3 %v864_v44  ;;  %v913_v3 = vld [vmem:[#allocation2 + $0x40] sm:$0xf]  ;;  %v1080_v4 = vld [vmem:[#allocation2 + $0x44] sm:$0xf0]  ;;  %v852_v9 = vor.u32 %v1103_v61, %v849_v62  ;;  %v942_v10 = vor.u32 %v1085_v1, %v939_v2  ;;  %v1083_v12 = vld [vmem:[#allocation2 + $0x64] sm:$0xf] }
  0x15   :  { %844 = vmatmul.msk.bf16.vlgmr.msra.gmra.mxu2 %vm83_vm2, %v52_v40  ;;  %v977_v6 = vld [vmem:[#allocation2 + $0xc0] sm:$0xf]  ;;  %v1096_v7 = vld [vmem:[#allocation2 + $0xc4] sm:$0xf0]  ;;  %v914_v11 = vor.u32 %v1080_v4, %v913_v3  ;;  %vm334_vm3 = vcmask 490496  }
  0x16   :  { %v1307_v13 = vld [vmem:[#allocation2 + $0x100] sm:$0x33]  ;;  %v978_v14 = vor.u32 %v1096_v7, %v977_v6  ;;  %v931_v15 = vld [vmem:[#allocation2 + $0x68] sm:$0xf0]  ;;  %v905_v17 = vld [vmem:[#allocation2 + $0x30] sm:$0xf] }
  0x17   :  { %363 = vmatpush.bf16.msrb.mxu0 %v868_v46  ;;  %547 = vmatpush.bf16.msrb.mxu1 %v930_v51  ;;  %v1078_v18 = vld [vmem:[#allocation2 + $0x34] sm:$0xf0]  ;;  %v468_v19 = vunpack.c.l.b16 %v1307_v13  ;;  %v969_v20 = vld [vmem:[#allocation2 + $0xb0] sm:$0xf]  ;;  %v1101_v22 = vld [vmem:[#allocation2 + $0xf4] sm:$0xf]  ;;  %v934_v25 = vor.u32 %v1083_v12, %v931_v15  ;;  %v136_v51 = vlaneseq }
  0x18   :  { %560 = vmatpush.bf16.msrb.mxu2 %v994_v52  ;;  %351 = vmatpush.bf16.msra.mxu3 %v856_v57  ;;  %v1094_v21 = vld [vmem:[#allocation2 + $0xb4] sm:$0xf0]  ;;  %v1003_v24 = vld [vmem:[#allocation2 + $0xf8] sm:$0xf0]  ;;  %v906_v26 = vor.u32 %v1078_v18, %v905_v17  ;;  %v1081_v27 = vld [vmem:[#allocation2 + $0x54] sm:$0xf] }
  0x19   :  { %v502_v23 = vpack.c.b16 %v468_v19, %v468_v19  ;;  %v923_v28 = vld [vmem:[#allocation2 + $0x58] sm:$0xf0]  ;;  %v1006_v29 = vor.u32 %v1101_v22, %v1003_v24  ;;  %v970_v30 = vor.u32 %v1094_v21, %v969_v20  ;;  %v897_v31 = vld [vmem:[#allocation2 + $0x20] sm:$0xf]  ;;  %v1076_v32 = vld [vmem:[#allocation2 + $0x24] sm:$0xf0] }
  0x1a   :  { %v961_v34 = vld [vmem:[#allocation2 + $0xa0] sm:$0xf]  ;;  %v1092_v35 = vld [vmem:[#allocation2 + $0xa4] sm:$0xf0]  ;;  %v926_v36 = vor.u32 %v1081_v27, %v923_v28  ;;  %v898_v37 = vor.u32 %v1076_v32, %v897_v31  ;;  %v1079_v38 = vld [vmem:[#allocation2 + $0x44] sm:$0xf] }
  0x1b   :  { %364 = vmatpush.bf16.msrb.mxu0 %v860_v58  ;;  %548 = vmatpush.bf16.msrb.mxu1 %v922_v63  ;;  %v541_v33 = vsel %vm87_vm0, %v502_v23, 0  ;;  %v962_v39 = vor.u32 %v1092_v35, %v961_v34  ;;  %v915_v40 = vld [vmem:[#allocation2 + $0x48] sm:$0xf0]  ;;  %v889_v41 = vld [vmem:[#allocation2 + $0x10] sm:$0xf]  ;;  %v1315_v52 = vand.u32 127, %v136_v51 }
  0x1c   :  { %561 = vmatpush.bf16.msrb.mxu2 %v986_v0  ;;  %352 = vmatpush.bf16.msra.mxu3 %v848_v5  ;;  %v1074_v42 = vld [vmem:[#allocation2 + $0x14] sm:$0xf0]  ;;  %v953_v43 = vld [vmem:[#allocation2 + $0x90] sm:$0xf]  ;;  %v918_v45 = vor.u32 %v1079_v38, %v915_v40  ;;  %v1077_v48 = vld [vmem:[#allocation2 + $0x34] sm:$0xf] }
  0x1d   :  { %v1090_v44 = vld [vmem:[#allocation2 + $0x94] sm:$0xf0]  ;;  %v890_v46 = vor.u32 %v1074_v42, %v889_v41  ;;  %v907_v49 = vld [vmem:[#allocation2 + $0x38] sm:$0xf0]  ;;  %v1318_v53 = vadd.s32 128, %v1315_v52  ;;  %v143_v54 = vand.u32 65535, %v1315_v52 }
  0x1e   :  { %v954_v47 = vor.u32 %v1090_v44, %v953_v43  ;;  %v910_v50 = vor.u32 %v1077_v48, %v907_v49  ;;  %v144_v56 = vshrl.u32 %v1315_v52, 16  ;;  %v1325_v63 = vadd.s32 256, %v1315_v52  ;;  %v881_v32 = vld [vmem:[#allocation2] sm:$0xf]  ;;  %v1072_v35 = vld [vmem:[#allocation2 + $0x4] sm:$0xf0] }
  0x1f   :  { %365 = vmatpush.bf16.msrb.mxu0 %v852_v9  ;;  %549 = vmatpush.bf16.msrb.mxu1 %v914_v11  ;;  %v172_v55 = vand.u32 65535, %v1318_v53  ;;  %v147_v57 = vmul.u32 40329, %v143_v54  ;;  %v173_v58 = vshrl.u32 %v1318_v53, 16  ;;  %v146_v60 = vmul.u32 55454, %v143_v54  ;;  %v1088_v40 = vld [vmem:[#allocation2 + $0x84] sm:$0xf0] }
  0x20   :  { %562 = vmatpush.bf16.msrb.mxu2 %v978_v14  ;;  %877 = vmatmul.msk.bf16.vlgmr.msra.gmra.mxu3 %vm334_vm3, %v287_v16  ;;  %v148_v61 = vmul.u32 55454, %v144_v56  ;;  %v201_v3 = vand.u32 65535, %v1325_v63  ;;  %v202_v6 = vshrl.u32 %v1325_v63, 16  ;;  %v149_v11 = vmul.u32 40329, %v144_v56  ;;  %v1075_v44 = vld [vmem:[#allocation2 + $0x24] sm:$0xf] }
  0x21   :  { %579 = vmatpush.bf16.msrb.mxu3 %v541_v33  ;;  %v176_v59 = vmul.u32 40329, %v172_v55  ;;  %v150_v62 = vshll.u32 %v147_v57, 16  ;;  %v175_v0 = vmul.u32 55454, %v172_v55  ;;  %v177_v1 = vmul.u32 55454, %v173_v58  ;;  %v995_v48 = vld [vmem:[#allocation2 + $0xe8] sm:$0xf0] }
  0x22   :  { %878 = vmatmul.msk.bf16.vlgmr.msrb.gmra.mxu0 %vm334_vm3, %v287_v16  ;;  %v152_v4 = vshll.u32 %v148_v61, 16  ;;  %v1163_v12 = vmov 0   ;;  %v178_v15 = vmul.u32 40329, %v173_v58  ;;  %v204_v17 = vmul.u32 55454, %v201_v3  ;;  %v1073_v49 = vld [vmem:[#allocation2 + $0x14] sm:$0xf] }
  0x23   :  { %585 = vmatpush.bf16.msra.mxu0 %v942_v10  ;;  %550 = vmatpush.bf16.msrb.mxu1 %v906_v26  ;;  %v179_v2 = vshll.u32 %v176_v59, 16  ;;  %v156_v5 = vadd.s32 %v150_v62, %v146_v60  ;;  %vm154_vm4 = vc.u32 %v146_v60, %v150_v62  ;;  %v181_v7 = vshll.u32 %v177_v1, 16  ;;  %v891_v54 = vld [vmem:[#allocation2 + $0x18] sm:$0xf0]  ;;  %v1097_v55 = vld [vmem:[#allocation2 + $0xd4] sm:$0xf] }
  0x24   :  { %563 = vmatpush.bf16.msrb.mxu2 %v970_v30  ;;  %v1329_v10 = vmul.u32 40329, %v201_v3  ;;  %v155_v14 = vsel %vm154_vm4, 1, %v1163_v12  ;;  %v1331_v18 = vmul.u32 55454, %v202_v6  ;;  %v151_v26 = vshrl.u32 %v147_v57, 16  ;;  %v987_v60 = vld [vmem:[#allocation2 + $0xd8] sm:$0xf0] }
  0x25   :  { %598 = vmatpush.bf16.msra.mxu3 %v1006_v29  ;;  %vm183_vm5 = vc.u32 %v175_v0, %v179_v2  ;;  %v185_v9 = vadd.s32 %v179_v2, %v175_v0  ;;  %vm158_vm6 = vc.u32 %v156_v5, %v152_v4  ;;  %v157_v20 = vadd.s32 %v155_v14, %v149_v11  ;;  %v1071_v62 = vld [vmem:[#allocation2 + $0x4] sm:$0xf]  ;;  %v883_v0 = vld [vmem:[#allocation2 + $0x8] sm:$0xf0]  ;;  %v1093_v11 = vld [vmem:[#allocation2 + $0xb4] sm:$0xf] }
  0x26   :  { %v184_v16 = vsel %vm183_vm5, 1, %v1163_v12  ;;  %v208_v19 = vshll.u32 %v1329_v10, 16  ;;  %v159_v21 = vsel %vm158_vm6, 1, %v1163_v12  ;;  %v210_v24 = vshll.u32 %v1331_v18, 16  ;;  %v979_v5 = vld [vmem:[#allocation2 + $0xc8] sm:$0xf0] }
  0x27   :  { %586 = vmatpush.bf16.msra.mxu0 %v934_v25  ;;  %551 = vmatpush.bf16.msrb.mxu1 %v898_v37  ;;  %vm187_vm7 = vc.u32 %v185_v9, %v181_v7  ;;  %v186_v22 = vadd.s32 %v184_v16, %v178_v15  ;;  %v161_v27 = vadd.s32 %v159_v21, %v157_v20  ;;  %v207_v28 = vmul.u32 40329, %v202_v6  ;;  %v963_v20 = vld [vmem:[#allocation2 + $0xa8] sm:$0xf0] }
  0x28   :  { %564 = vmatpush.bf16.msrb.mxu2 %v962_v39  ;;  %v188_v23 = vsel %vm187_vm7, 1, %v1163_v12  ;;  %vm212_vm8 = vc.u32 %v204_v17, %v208_v19  ;;  %v214_v25 = vadd.s32 %v208_v19, %v204_v17  ;;  %v180_v29 = vshrl.u32 %v176_v59, 16  ;;  %v1091_v19 = vld [vmem:[#allocation2 + $0xa4] sm:$0xf] }
  0x29   :  { %v190_v30 = vadd.s32 %v188_v23, %v186_v22  ;;  %v213_v31 = vsel %vm212_vm8, 1, %v1163_v12  ;;  %v153_v33 = vshrl.u32 %v148_v61, 16  ;;  %v162_v34 = vadd.s32 %v161_v27, %v151_v26  ;;  %v955_v26 = vld [vmem:[#allocation2 + $0x98] sm:$0xf0] }
  0x2a   :  { %vm216_vm9 = vc.u32 %v214_v25, %v210_v24  ;;  %v215_v37 = vadd.s32 %v213_v31, %v207_v28  ;;  %v182_v38 = vshrl.u32 %v177_v1, 16  ;;  %v882_v42 = vor.u32 %v1072_v35, %v881_v32  ;;  %v1095_v1 = vld [vmem:[#allocation2 + $0xc4] sm:$0xf]  ;;  %v1089_v25 = vld [vmem:[#allocation2 + $0x94] sm:$0xf]  ;;  %v1118_v35 = vld [vmem:[%s1436_s6 + $0x38] sm:$0xff] }
  0x2b   :  { %587 = vmatpush.bf16.msra.mxu0 %v926_v36  ;;  %552 = vmatpush.bf16.msrb.mxu1 %v890_v46  ;;  %v945_v36 = vld [vmem:[#allocation2 + $0x80] sm:$0xf]  ;;  %v191_v39 = vadd.s32 %v190_v30, %v180_v29  ;;  %v217_v41 = vsel %vm216_vm9, 1, %v1163_v12  ;;  %v209_v56 = vshrl.u32 %v1329_v10, 16  ;;  %v894_v59 = vor.u32 %v1073_v49, %v891_v54  ;;  %v971_v12 = vld [vmem:[#allocation2 + $0xb8] sm:$0xf0] }
  0x2c   :  { %565 = vmatpush.bf16.msrb.mxu2 %v954_v47  ;;  %v946_v43 = vor.u32 %v1088_v40, %v945_v36  ;;  %v1099_v47 = vld [vmem:[#allocation2 + $0xe4] sm:$0xf]  ;;  %v219_v57 = vadd.s32 %v217_v41, %v215_v37  ;;  %v990_v61 = vor.u32 %v1097_v55, %v987_v60  ;;  %v211_v3 = vshrl.u32 %v1331_v18, 16  ;;  %v947_v31 = vld [vmem:[#allocation2 + $0x88] sm:$0xf0]  ;;  %v1114_v60 = vld [vmem:[%s1436_s6 + $0x18] sm:$0xff] }
  0x2d   :  { %v998_v51 = vor.u32 %v1099_v47, %v995_v48  ;;  %v192_v58 = vadd.s32 %v191_v39, %v182_v38  ;;  %v886_v7 = vor.u32 %v1071_v62, %v883_v0  ;;  %v982_v9 = vor.u32 %v1095_v1, %v979_v5  ;;  %v1087_v30 = vld [vmem:[#allocation2 + $0x84] sm:$0xf]  ;;  %v1112_v62 = vld [vmem:[%s1436_s6 + $0x8] sm:$0xff]  ;;  %v662_v0 = vld [vmem:[%s1436_s6 + $0x60] sm:$0xf] }
  0x2e   :  { %v220_v4 = vadd.s32 %v219_v57, %v209_v56  ;;  %v469_v10 = vunpack.c.h.b16 %v1307_v13  ;;  %v974_v17 = vor.u32 %v1093_v11, %v971_v12  ;;  %v966_v13 = vor.u32 %v1091_v19, %v963_v20  ;;  %v1122_v5 = vld [vmem:[%s1436_s6 + $0x58] sm:$0xff]  ;;  %v1119_v12 = vld [vmem:[%s1436_s6 + $0x40] sm:$0xff]  ;;  %v790_v20 = vld [vmem:[%s1438_s8 + $0x30] sm:$0xff] }
  0x2f   :  { %588 = vmatpush.bf16.msra.mxu0 %v918_v45  ;;  %v899_v45 = vld [vmem:[#allocation2 + $0x28] sm:$0xf0]  ;;  %553 = vmatpush.bf16.msrb.mxu1 %v882_v42  ;;  %v193_v6 = vshrl.u32 %v192_v58, 3  ;;  %v958_v28 = vor.u32 %v1089_v25, %v955_v26  ;;  %v950_v32 = vor.u32 %v1087_v30, %v947_v31  ;;  %v1165_v48 = vmov 0.0   ;;  %v791_v19 = vld [vmem:[%s1438_s8 + $0x38] sm:$0xf] }
  0x30   :  { %v902_v46 = vor.u32 %v1075_v44, %v899_v45  ;;  %566 = vmatpush.bf16.msrb.mxu2 %v946_v43  ;;  %599 = vmatpush.bf16.msra.mxu3 %v998_v51  ;;  %v221_v15 = vadd.s32 %v220_v4, %v211_v3  ;;  %v503_v18 = vpack.c.b16 %v469_v10, %v469_v10  ;;  %v1164_v43 = vmov 1.0|1.0   ;;  %v1116_v58 = vld [vmem:[%s1436_s6 + $0x28] sm:$0xff]  ;;  %v788_v26 = vld [vmem:[%s1438_s8 + $0x20] sm:$0xff] }
  0x31   :  { %v194_v16 = vmul.u32 13, %v193_v6  ;;  %v716_v1 = vunpack.c.l.b16 %v662_v0  ;;  %v1121_v6 = vld [vmem:[%s1436_s6 + $0x50] sm:$0xff]  ;;  %v1120_v10 = vld [vmem:[%s1436_s6 + $0x48] sm:$0xff] }
  0x32   :  { %v222_v22 = vshrl.u32 %v221_v15, 3  ;;  %v544_v24 = vsel %vm87_vm0, %v503_v18, 0  ;;  %v785_v31 = vld [vmem:[%s1438_s8 + $0x8] sm:$0xff] }
  0x33   :  { %589 = vmatpush.bf16.msra.mxu0 %v910_v50  ;;  %v163_v50 = vadd.s32 %v162_v34, %v153_v33  ;;  %v195_v23 = vsub.s32 %v1318_v53, %v194_v16  ;;  %618 = vmatpush.bf16.msra.mxu1 %v544_v24  ;;  %v729_v3 = vpack.c.b16 %v716_v1, %v716_v1  ;;  %v624_v16 = vld [vmem:[%s1435_s5] sm:$0x3] }
  0x34   :  { %600 = vmatpush.bf16.msra.mxu3 %v990_v61  ;;  %v223_v27 = vmul.u32 13, %v222_v22  ;;  %750 = vmatpush.bf16.msra.mxu2 %v1118_v35  ;;  %v1113_v61 = vld [vmem:[%s1436_s6 + $0x10] sm:$0xff]  ;;  %v789_v22 = vld [vmem:[%s1438_s8 + $0x28] sm:$0xff] }
  0x35   :  { %v164_v2 = vshrl.u32 %v163_v50, 3  ;;  %vm228_vm12 = vcmp.ne.s32.totalorder %v195_v23, 0  ;;  %vm231_vm13 = vcmp.lt.s32.totalorder %v195_v23, 0 }
  0x36   :  { %vm234_vm15 = vmand %vm231_vm13, %vm228_vm12  ;;  %v224_v53 = vsub.s32 %v1325_v63, %v223_v27  ;;  %v1117_v63 = vld [vmem:[%s1436_s6 + $0x30] sm:$0xff]  ;;  %vm742_vm12 = vcmask 588800  }
  0x37   :  { %590 = vmatpush.bf16.msra.mxu0 %v902_v46  ;;  %v165_v14 = vmul.u32 13, %v164_v2  ;;  %v1111_v2 = vld [vmem:[%s1436_s6] sm:$0xff] }
  0x38   :  { %601 = vmatpush.bf16.msra.mxu3 %v982_v9  ;;  %vm229_vm0 = vcmp.ne.s32.totalorder %v224_v53, 0  ;;  %vm232_vm1 = vcmp.lt.s32.totalorder %v224_v53, 0  ;;  %v238_v38 = vadd.s32 13, %v224_v53  ;;  %751 = vmatpush.bf16.msra.mxu2 %v1117_v63 }
  0x39   :  { %v166_v21 = vsub.s32 %v1315_v52, %v165_v14  ;;  %v237_v52 = vadd.s32 13, %v195_v23  ;;  %vm235_vm4 = vmand %vm232_vm1, %vm229_vm0 }
  0x3a   :  { %v241_v41 = vsel %vm235_vm4, %v238_v38, %v224_v53  ;;  %v627_v38 = vperm.slane %v624_v16, 1 }
  0x3b   :  { %591 = vmatpush.bf16.msra.mxu0 %v894_v59  ;;  %vm227_vm10 = vcmp.ne.s32.totalorder %v166_v21, 0  ;;  %vm230_vm11 = vcmp.lt.s32.totalorder %v166_v21, 0  ;;  %v236_v29 = vadd.s32 13, %v166_v21  ;;  %v240_v34 = vsel %vm234_vm15, %v237_v52, %v195_v23  ;;  %v1115_v59 = vld [vmem:[%s1436_s6 + $0x20] sm:$0xff]  ;;  %v786_v52 = vld [vmem:[%s1438_s8 + $0x10] sm:$0xff] }
  0x3c   :  { %602 = vmatpush.bf16.msra.mxu3 %v974_v17  ;;  %vm233_vm14 = vmand %vm230_vm11, %vm227_vm10  ;;  %v243_v37 = vcvt.s32.f32 %v240_v34  ;;  %v244_v44 = vcvt.s32.f32 %v241_v41  ;;  %vm536_vm10 = vcmask 31744   ;;  %752 = vmatpush.bf16.msra.mxu2 %v1116_v58  ;;  %vm746_vm11 = vcmask 1043456   ;;  %v784_v34 = vld [vmem:[%s1438_s8] sm:$0xff] }
  0x3d   :  { %v239_v33 = vsel %vm233_vm14, %v236_v29, %v166_v21  ;;  %v748_v4 = vsel %vm746_vm11, %v729_v3, 0  ;;  %v626_v21 = vperm.slane %v624_v16, 0  ;;  %vm823_vm14 = vcmask 7168  }
  0x3e   :  { %v242_v36 = vcvt.s32.f32 %v239_v33 }
  0x3f   :  { %592 = vmatpush.bf16.msra.mxu0 %v886_v7 }
  0x40   :  { %603 = vmatpush.bf16.msra.mxu3 %v966_v13  ;;  %753 = vmatpush.bf16.msra.mxu2 %v1115_v59 }
  0x43   :  { %766 = vmatpush.bf16.msrb.mxu0 %v748_v4 }
  0x44   :  { %604 = vmatpush.bf16.msra.mxu3 %v958_v28  ;;  %754 = vmatpush.bf16.msra.mxu2 %v1114_v60  ;;  %v787_v28 = vld [vmem:[%s1438_s8 + $0x18] sm:$0xff] }
  0x47   :  { %767 = vmatpush.bf16.msrb.mxu0 %v1122_v5 }
  0x48   :  { %605 = vmatpush.bf16.msra.mxu3 %v950_v32  ;;  %755 = vmatpush.bf16.msra.mxu2 %v1113_v61 }
  0x4b   :  { %768 = vmatpush.bf16.msrb.mxu0 %v1121_v6 }
  0x4c   :  { %756 = vmatpush.bf16.msra.mxu2 %v1112_v62 }
  0x4f   :  { %769 = vmatpush.bf16.msrb.mxu0 %v1120_v10 }
  0x50   :  { %757 = vmatpush.bf16.msra.mxu2 %v1111_v2 }
  0x53   :  { %770 = vmatpush.bf16.msrb.mxu0 %v1119_v12 }
  0x8f   :  { %v106_v39 = vpop.f32.mrf.mxu0  ;;  %v119_v40 = vpop.f32.mrf.mxu1 }
  0x90   :  { %vm245_vm5 = vcmp.eq.f32.partialorder %v106_v39, %v242_v36  ;;  %vm246_vm6 = vcmp.eq.f32.partialorder %v119_v40, %v243_v37 }
  0x91   :  { %vm1007_vm7 = vmpackc.low %vm245_vm5, %vm245_vm5 }
  0x92   :  { %vm1348_vm8 = vmpackc.low %vm246_vm6, %vm246_vm6  ;;  %1008 = vmatmul.msk.bf16.vlgmr.msrb.gmra.mxu1 %vm1007_vm7, %v1164_v43  ;;  %1013 = vmatmul.msk.bf16.vlgmr.msra.gmra.mxu0 %vm1007_vm7, %v1164_v43 }
  0x93   :  { %1010 = vmatmul.msk.bf16.vlgmr.msrb.gmra.mxu2 %vm1348_vm8, %v1164_v43  ;;  %1066 = vmatpush.msk.msrb.mxu1 %vm746_vm11, %v791_v19 }
  0x95   :  { %807 = vmatpush.msrb.mxu1 %v790_v20 }
  0x97   :  { %v108_v46 = vpop.f32.mrf.mxu0  ;;  %v121_v47 = vpop.f32.mrf.mxu1  ;;  %808 = vmatpush.msrb.mxu1 %v789_v22 }
  0x98   :  { %v132_v45 = vpop.f32.mrf.mxu2 }
  0x99   :  { %vm247_vm9 = vcmp.eq.f32.partialorder %v132_v45, %v244_v44  ;;  %809 = vmatpush.msrb.mxu1 %v788_v26  ;;  %v1129_v45 = vld [vmem:[%s1437_s7] ss:$0 sm:$0xff] }
  0x9a   :  { %v250_v49 = vsel %vm247_vm9, 1.0, %v1165_v48 }
  0x9b   :  { %v253_v50 = vpack.c.bf16 %v250_v49, %v250_v49  ;;  %810 = vmatpush.msrb.mxu1 %v787_v28 }
  0x9d   :  { %1011 = vmatmul.msk.bf16.vlgmr.msrb.gmra.mxu3 %vm536_vm10, %v253_v50  ;;  %811 = vmatpush.msrb.mxu1 %v786_v52 }
  0x9f   :  { %v1354_v54 = vpop.f32.mrf.mxu0  ;;  %812 = vmatpush.msrb.mxu1 %v785_v31 }
  0xa0   :  { %v134_v51 = vpop.f32.mrf.mxu2 }
  0xa1   :  { %813 = vmatpush.msrb.mxu1 %v784_v34 }
  0xa2   :  { %1016 = vmatmul.msk.bf16.vlgmr.msra.gmra.mxu1 %vm536_vm10, %v253_v50 }
  0xa3   :  { %v354_v55 = vpop.f32.mrf.mxu3 }
  0xa7   :  { %v369_v56 = vpop.f32.mrf.mxu0 }
  0xab   :  { %v356_v57 = vpop.f32.mrf.mxu3 }
  0xad   :  { %1015 = vmatmul.msk.bf16.vlgmr.msra.gmra.mxu3 %vm1348_vm8, %v1164_v43 }
  0xb2   :  { %1067 = vmatmul.msk.f32.vlgmr.msrb.gmra.mxu1 %vm334_vm3, %v1305_v8 }
 0x10f   :  { %v555_v7 = vpop.f32.mrf.mxu1  ;;  %v594_v9 = vpop.f32.mrf.mxu0 }
 0x110   :  { %v556_v17 = vadd.f32 %v555_v7, %v354_v55  ;;  %v595_v35 = vadd.f32 %v594_v9, %v1354_v54 }
 0x116   :  { %v568_v11 = vpop.f32.mrf.mxu2 }
 0x117   :  { %v557_v14 = vpop.f32.mrf.mxu1  ;;  %v596_v15 = vpop.f32.mrf.mxu0  ;;  %v569_v18 = vadd.f32 %v568_v11, %v556_v17 }
 0x11e   :  { %v570_v24 = vpop.f32.mrf.mxu2 }
 0x11f   :  { %v620_v25 = vpop.f32.mrf.mxu1 }
 0x120   :  { %v581_v23 = vpop.f32.mrf.mxu3 }
 0x121   :  { %v582_v13 = vadd.f32 %v581_v23, %v569_v18 }
 0x123   :  { %v630_v27 = vadd.f32 %v626_v21, %v582_v13 }
 0x125   :  { %v632_v29 = vmul.f32 0.01, %v630_v27 }
 0x127   :  { %v634_v30 = vmax.f32 %v630_v27, %v632_v29  ;;  %v622_v33 = vpop.f32.mrf.mxu1 }
 0x128   :  { %v583_v53 = vpop.f32.mrf.mxu3 }
 0x129   :  { %v636_v32 = vpack.c.bf16 %v634_v30, %v634_v30 }
 0x12b   :  { %758 = vmatmul.bf16.vlgmr.msra.gmra.mxu2 %v636_v32 }
 0x12f   :  { %v815_v56 = vpop.f32.mrf.mxu1 }
 0x130   :  { %v607_v36 = vpop.f32.mrf.mxu3  ;;  %vm818_vm3 = vcmp.eq.f32.partialorder %v815_v56, 0.0 }
 0x131   :  { %v608_v37 = vadd.f32 %v607_v36, %v595_v35 }
 0x133   :  { %v621_v63 = vadd.f32 %v620_v25, %v608_v37 }
 0x135   :  { %v631_v39 = vadd.f32 %v627_v38, %v621_v63 }
 0x137   :  { %v633_v40 = vmul.f32 0.01, %v631_v39 }
 0x138   :  { %v609_v41 = vpop.f32.mrf.mxu3 }
 0x139   :  { %v635_v42 = vmax.f32 %v631_v39, %v633_v40 }
 0x13b   :  { %v637_v43 = vpack.c.bf16 %v635_v42, %v635_v42 }
 0x13d   :  { %1065 = vmatmul.msk.bf16.vlgmr.msrb.gmra.mxu0 %vm742_vm12, %v637_v43 }
 0x1ae   :  { %v759_v44 = vpop.f32.mrf.mxu2 }
 0x1af   :  { %v760_v8 = vadd.f32 %v1129_v45, %v759_v44 }
 0x1b6   :  { %v761_v46 = vpop.f32.mrf.mxu2 }
 0x1ba   :  { %v772_v47 = vpop.f32.mrf.mxu0 }
 0x1bb   :  { %v773_v48 = vadd.f32 %v772_v47, %v760_v8 }
 0x1bd   :  { %v777_v49 = vmin.f32 %v773_v48, 20.0  ;;  %vm776_vm13 = vcmp.gt.f32.partialorder %v773_v48, 20.0 }
 0x1bf   :  { %v778_v50 = vmul.f32 1.442695, %v777_v49 }
 0x1c1   :  { %1130 = vpow2.f32 %v778_v50 }
 0x1c2   :  { %v774_v51 = vpop.f32.mrf.mxu0 }
 0x1c7   :  { %v1131_v54 = vpop.eup %1130 }
 0x1c8   :  { %v780_v55 = vadd.f32 1.0, %v1131_v54 }
 0x1ca   :  { %1132 = vlog2.f32 %v780_v55 }
 0x1d0   :  { %v1133_v57 = vpop.eup %1132 }
 0x1d1   :  { %v782_v58 = vmul.f32 0.6931472, %v1133_v57 }
 0x1d3   :  { %v783_v59 = vsel %vm776_vm13, %v773_v48, %v782_v58 }
 0x1d4   :  { %v819_v60 = vsel %vm818_vm3, 0.0, %v783_v59 }
 0x1d5   :  { %v820_v61 = vsel %vm83_vm2, %v819_v60, 0.0 }
 0x1d6   :  { %821 = vadd.xlane.f32.xlu0 %v820_v61 }
 0x249   :  { %v822_v62 = vpop.xlane.xlu0 %821 }
 0x24a   :  { %824 = vst.msk [vmem:[%s1439_s9] sm:$0xff] %vm823_vm14, %v822_v62 }
 0x24b   :  { %829 = vsyncpa [#allocation3], 1 }

</bundles_post_ra>
